<compile_context>
chip_gen: v7x
topology: tpu7x:2x2x1
jax: 0.10.0
libtpu: 0.0.40
codegen_flags: <defaults>
</compile_context>

<pallas_src>
import functools

import jax
import jax.numpy as jnp
from jax import lax
from jax.experimental import pallas as pl
from jax.experimental.pallas import tpu as pltpu

LANE = 128
# Explicit VMEM budget: adj tiles (2 bufs) + resident Z + W2 + acc + out tiles
# stay well under this for tile_n<=512 / resident-Z<=24 MiB; 48 MiB fits
# v7x's 64 MiB physical VMEM and exceeds the scoped defaults everywhere.
VMEM_LIMIT_BYTES = 48 * 1024 * 1024
# Keep Z resident in VMEM (DMA'd once) when Z + W2 fit under this budget.
Z_RESIDENT_BYTES = 24 * 1024 * 1024


def _round_up(v, m):
    return ((v + m - 1) // m) * m


def _pad2(x, rows, cols):
    r, c = x.shape
    return jnp.pad(x, ((0, rows - r), (0, cols - c)))


def _compiler_params(*semantics):
    return pltpu.CompilerParams(
        dimension_semantics=semantics,
        vmem_limit_bytes=VMEM_LIMIT_BYTES,
    )


# ---------------------------------------------------------------------------
# Pass 1 (prepass, single read of the f32 adjacency):
#   P = relu(adj)                      -> bf16 [N, N]
#   d = rsqrt(sum_j P[i, j] + 1)       -> f32  [N, 1]   (self-loop included)
# Degree accumulation stays in f32 (computed before the bf16 rounding of P).
# ---------------------------------------------------------------------------
def _prepass_kernel(adj_ref, p_ref, d_ref, acc_ref):
    k = pl.program_id(1)

    @pl.when(k == 0)
    def _():
        acc_ref[...] = jnp.zeros_like(acc_ref)

    p = jnp.maximum(adj_ref[...], 0.0)               # relu(ones * adj_mask)
    p_ref[...] = p.astype(jnp.bfloat16)              # store P once, bf16
    acc_ref[...] += jnp.sum(p, axis=1, keepdims=True)

    @pl.when(k == pl.num_programs(1) - 1)
    def _():
        # +1.0 is the self-loop, so deg >= 1 and rsqrt needs no guard.
        d_ref[...] = lax.rsqrt(acc_ref[...] + 1.0)


def _prepass(adj_p, tile_n):
    np_ = adj_p.shape[0]
    nt = np_ // tile_n
    return pl.pallas_call(
        _prepass_kernel,
        out_shape=(jax.ShapeDtypeStruct((np_, np_), jnp.bfloat16),
                   jax.ShapeDtypeStruct((np_, 1), jnp.float32)),
        grid_spec=pltpu.PrefetchScalarGridSpec(
            num_scalar_prefetch=0,
            grid=(nt, nt),
            in_specs=[pl.BlockSpec((tile_n, tile_n), lambda i, k: (i, k))],
            out_specs=(pl.BlockSpec((tile_n, tile_n), lambda i, k: (i, k)),
                       pl.BlockSpec((tile_n, 1), lambda i, k: (i, 0))),
            scratch_shapes=[pltpu.VMEM((tile_n, 1), jnp.float32)],
        ),
        compiler_params=_compiler_params("parallel", "arbitrary"),
    )(adj_p)


# ---------------------------------------------------------------------------
# Pass 2 (layer 1 transform): Z1 = D^-1/2 * (X @ W1_eff)      [N, H] bf16
# W1_eff = (W1_orig * W1_mask) in bf16 is precomputed once in the wrapper.
# ---------------------------------------------------------------------------
def _transform_kernel(x_ref, w_ref, d_ref, z_ref):
    xw = jnp.dot(x_ref[...], w_ref[...], preferred_element_type=jnp.float32)
    z_ref[...] = (d_ref[...] * xw).astype(z_ref.dtype)


def _transform(x_p, w_eff, d, tile_n):
    np_, fp = x_p.shape
    hp = w_eff.shape[1]
    return pl.pallas_call(
        _transform_kernel,
        out_shape=jax.ShapeDtypeStruct((np_, hp), jnp.bfloat16),
        grid_spec=pltpu.PrefetchScalarGridSpec(
            num_scalar_prefetch=0,
            grid=(np_ // tile_n,),
            in_specs=[
                pl.BlockSpec((tile_n, fp), lambda i: (i, 0)),
                pl.BlockSpec((fp, hp), lambda i: (0, 0)),     # resident
                pl.BlockSpec((tile_n, 1), lambda i: (i, 0)),
            ],
            out_specs=pl.BlockSpec((tile_n, hp), lambda i: (i, 0)),
        ),
        compiler_params=_compiler_params("parallel"),
    )(x_p, w_eff, d)


# ---------------------------------------------------------------------------
# Pass 3 (propagation):
#   acc = (P + I) @ Z        (bf16 MXU, f32 acc; +I on diagonal blocks only)
#   h   = D^-1/2 * acc + b   [+ relu]
#   fused:     out = D^-1/2 * (h_bf16 @ W2_eff)   (layer-2 transform fused in)
#   non-fused: out = h
# Z may be VMEM-resident (constant index_map full block, sliced with pl.ds).
# ---------------------------------------------------------------------------
def _prop_kernel(p_ref, z_ref, d_ref, b_ref, *rest, tile_n, z_resident,
                 fused, apply_relu):
    if fused:
        w2_ref, out_ref, acc_ref = rest
    else:
        out_ref, acc_ref = rest

    i = pl.program_id(0)
    k = pl.program_id(1)

    @pl.when(k == 0)
    def _():
        acc_ref[...] = jnp.zeros_like(acc_ref)

    if z_resident:
        off = pl.multiple_of(k * tile_n, tile_n)
        z = z_ref[pl.ds(off, tile_n), :]          # k-th row block of resident Z
    else:
        z = z_ref[...]

    acc_ref[...] += jnp.dot(p_ref[...], z, preferred_element_type=jnp.float32)

    @pl.when(k == i)
    def _():
        # Self-loop contribution: I @ Z == Z on the diagonal block only.
        acc_ref[...] += z.astype(jnp.float32)

    @pl.when(k == pl.num_programs(1) - 1)
    def _():
        h = d_ref[...] * acc_ref[...] + b_ref[...]
        if apply_relu:
            h = jnp.maximum(h, 0.0)
        if fused:
            z2 = d_ref[...] * jnp.dot(h.astype(jnp.bfloat16), w2_ref[...],
                                      preferred_element_type=jnp.float32)
            out_ref[...] = z2.astype(out_ref.dtype)
        else:
            out_ref[...] = h.astype(out_ref.dtype)


def _propagate(p_bf16, z, d, b_p, *, tile_n, w2=None, apply_relu, out_dtype):
    np_ = p_bf16.shape[0]
    hz = z.shape[1]
    fused = w2 is not None
    out_cols = w2.shape[1] if fused else hz
    nt = np_ // tile_n

    w2_bytes = (hz * out_cols * 2) if fused else 0
    z_resident = (np_ * hz * 2 + w2_bytes) <= Z_RESIDENT_BYTES

    if z_resident:
        z_spec = pl.BlockSpec((np_, hz), lambda i, k: (0, 0))     # resident
    else:
        z_spec = pl.BlockSpec((tile_n, hz), lambda i, k: (k, 0))  # streamed

    # NOTE: if the bf16 adj DMA is still exposed at large tile_n, the adj
    # BlockSpec is the place to add pipeline_mode=pl.Buffered(3).
    in_specs = [
        pl.BlockSpec((tile_n, tile_n), lambda i, k: (i, k)),
        z_spec,
        pl.BlockSpec((tile_n, 1), lambda i, k: (i, 0)),
        pl.BlockSpec((1, hz), lambda i, k: (0, 0)),
    ]
    operands = [p_bf16, z, d, b_p]
    if fused:
        in_specs.append(pl.BlockSpec((hz, out_cols), lambda i, k: (0, 0)))
        operands.append(w2)

    kernel = functools.partial(_prop_kernel, tile_n=tile_n,
                               z_resident=z_resident, fused=fused,
                               apply_relu=apply_relu)
    return pl.pallas_call(
        kernel,
        out_shape=jax.ShapeDtypeStruct((np_, out_cols), out_dtype),
        grid_spec=pltpu.PrefetchScalarGridSpec(
            num_scalar_prefetch=0,
            grid=(nt, nt),
            in_specs=in_specs,
            out_specs=pl.BlockSpec((tile_n, out_cols), lambda i, k: (i, 0)),
            scratch_shapes=[pltpu.VMEM((tile_n, hz), jnp.float32)],
        ),
        compiler_params=_compiler_params("parallel", "arbitrary"),
    )(*operands)


# ---------------------------------------------------------------------------
# Wrapper: pad to TPU-friendly shapes, run prepass + 3 fused tiled passes.
# ---------------------------------------------------------------------------
def glt_gcn_forward(adj_dense, x, w1_orig, w1_mask, b1, w2_orig, w2_mask, b2,
                    *, tile_n=256):
    """GLT-masked 2-layer GCN forward.

    adj_dense[i, j] holds the adjacency-mask value of edge j -> i (densified
    edge mask; relu / masking happens inside the kernels).
    """
    n, f_in = x.shape
    hid = w1_orig.shape[1]
    n_cls = w2_orig.shape[1]

    # 256 keeps the MXU contraction 256-deep on v6e/v7x; shrink for tiny N.
    tile_n = max(LANE, min(tile_n, _round_up(n, LANE)))

    np_ = _round_up(n, tile_n)
    fp = _round_up(f_in, LANE)
    hp = _round_up(hid, LANE)
    cp = _round_up(n_cls, LANE)

    # GLT parameter masking (param_orig * param_mask), hoisted out of the
    # per-tile loops: one bf16 effective-weight buffer per layer.
    w1_eff = _pad2((w1_orig * w1_mask).astype(jnp.bfloat16), fp, hp)
    w2_eff = _pad2((w2_orig * w2_mask).astype(jnp.bfloat16), hp, cp)
    b1_p = _pad2(b1.astype(jnp.float32), 1, hp)
    b2_p = _pad2(b2.astype(jnp.float32), 1, cp)
    x_p = _pad2(x.astype(jnp.float32), np_, fp).astype(jnp.bfloat16)
    adj_p = _pad2(adj_dense.astype(jnp.float32), np_, np_)

    # Prepass: single f32 read of adj -> bf16 P + f32 D^-1/2.
    p_bf16, d = _prepass(adj_p, tile_n)                  # (Np,Np) bf16, (Np,1)
    # Layer 1 transform: Z1 = D^-1/2 (X @ W1_eff).
    z1 = _transform(x_p, w1_eff, d, tile_n)              # (Np, Hp) bf16
    # Layer 1 propagation fused with layer 2 transform:
    #   Z2 = D^-1/2 (relu(D^-1/2 (P+I) Z1 + b1) @ W2_eff).  H never hits HBM.
    z2 = _propagate(p_bf16, z1, d, b1_p, tile_n=tile_n, w2=w2_eff,
                    apply_relu=True, out_dtype=jnp.bfloat16)   # (Np, Cp) bf16
    # Layer 2 propagation: OUT = D^-1/2 (P+I) Z2 + b2.
    out = _propagate(p_bf16, z2, d, b2_p, tile_n=tile_n,
                     apply_relu=False, out_dtype=jnp.float32)  # (Np, Cp) f32
    return out[:n, :n_cls]


if __name__ == "__main__":
    key = jax.random.PRNGKey(0)
    k_x, k_w1, k_w2, k_m1, k_m2, k_adj = jax.random.split(key, 6)

    N, F_IN, HID, C = 32, 16, 32, 8

    # Node features.
    x = jax.random.normal(k_x, (N, F_IN), dtype=jnp.float32)

    # GCN parameters ("*_orig").
    w1_orig = (0.1 * jax.random.normal(k_w1, (F_IN, HID))).astype(jnp.float32)
    w2_orig = (0.1 * jax.random.normal(k_w2, (HID, C))).astype(jnp.float32)
    b1 = jnp.zeros((1, HID), dtype=jnp.float32)
    b2 = jnp.zeros((1, C), dtype=jnp.float32)

    # Weight masks ("*_mask") — binary pruning masks.
    w1_mask = (jax.random.uniform(k_m1, (F_IN, HID)) > 0.2).astype(jnp.float32)
    w2_mask = (jax.random.uniform(k_m2, (HID, C)) > 0.2).astype(jnp.float32)

    # Graph: undirected ring; per-edge adj_mask values densified into
    # A[dst, src] (incoming-edge convention -> matches PyG gcn_norm's single
    # target-degree normalization even for asymmetric edge masks).
    # TODO(synk): the sparse edge_index -> dense adjacency scatter stays
    # host/XLA glue (no clean Pallas scatter); at production sizes, batch
    # several GLT mask candidates per call to amortize launch overhead.
    src = jnp.arange(N, dtype=jnp.int32)
    dst = (src + 1) % N
    edge_src = jnp.concatenate([src, dst])
    edge_dst = jnp.concatenate([dst, src])
    adj_mask_vals = jax.random.normal(k_adj, (2 * N,), dtype=jnp.float32)
    adj_dense = jnp.zeros((N, N), jnp.float32).at[edge_dst, edge_src].set(
        adj_mask_vals)

    out = glt_gcn_forward(adj_dense, x, w1_orig, w1_mask, b1,
                          w2_orig, w2_mask, b2)
    out = jax.block_until_ready(out)

    # ---- Reference 1: identical math incl. the bf16 MXU casts (tight) ----
    bf16 = jnp.bfloat16
    P = jnp.maximum(adj_dense, 0.0)                    # f32 relu'd edge mask
    P_bf = P.astype(bf16)                              # bf16 P used in matmuls
    d_ref = lax.rsqrt(P.sum(axis=1, keepdims=True) + 1.0)   # degree from f32
    w1m = (w1_orig * w1_mask).astype(bf16)
    w2m = (w2_orig * w2_mask).astype(bf16)

    z1_ref = (d_ref * jnp.dot(x.astype(bf16), w1m,
                              preferred_element_type=jnp.float32)).astype(bf16)
    h_ref = jnp.maximum(
        d_ref * (jnp.dot(P_bf, z1_ref, preferred_element_type=jnp.float32)
                 + z1_ref.astype(jnp.float32)) + b1, 0.0)
    z2_ref = (d_ref * jnp.dot(h_ref.astype(bf16), w2m,
                              preferred_element_type=jnp.float32)).astype(bf16)
    ref = (d_ref * (jnp.dot(P_bf, z2_ref, preferred_element_type=jnp.float32)
                    + z2_ref.astype(jnp.float32)) + b2)
    assert jnp.allclose(out, ref, atol=1e-3, rtol=1e-3), "mismatch vs bf16 ref"

    # ---- Reference 2: pure-f32 GCN math (loose sanity check only) ----
    a_full = P + jnp.eye(N, dtype=jnp.float32)
    a_norm = d_ref * a_full * d_ref.T                  # single degree vector
    w1f, w2f = w1_orig * w1_mask, w2_orig * w2_mask
    h32 = jnp.maximum(a_norm @ (x @ w1f) + b1, 0.0)
    ref32 = a_norm @ (h32 @ w2f) + b2
    assert jnp.allclose(out, ref32, atol=1e-1, rtol=1e-1), "mismatch vs f32 ref"

    print("KERNEL_OK")
</pallas_src>

<mosaic_0001>
module attributes {stable_mosaic.version = 11 : i64} {
  func.func @_prepass_kernel(%arg0: i32, %arg1: i32, %arg2: memref<128x128xf32, #tpu.memory_space<vmem>>, %arg3: memref<128x128xbf16, #tpu.memory_space<vmem>>, %arg4: memref<128x1xf32, #tpu.memory_space<vmem>>, %arg5: memref<128x1xf32, #tpu.memory_space<vmem>>) attributes {dimension_semantics = [#tpu.dimension_semantics<parallel>, #tpu.dimension_semantics<arbitrary>], iteration_bounds = array<i64: 1, 1>, scalar_prefetch = 0 : i64, scratch_operands = 1 : i64, tpu.core_type = #tpu.core_type<tc>, window_params = [{transform_indices = @transform_0, window_bounds = array<i64: 128, 128>}, {transform_indices = @transform_1, window_bounds = array<i64: 128, 128>}, {transform_indices = @transform_2, window_bounds = array<i64: 128, 1>}]} {
    %c0_i32 = arith.constant 0 : i32
    %0 = arith.cmpi eq, %arg1, %c0_i32 : i32
    %1 = arith.extui %0 : i1 to i32
    %c0_i32_0 = arith.constant 0 : i32
    %2 = arith.cmpi ne, %1, %c0_i32_0 : i32
    scf.if %2 {
      %cst_11 = arith.constant 0.000000e+00 : f32
      %16 = vector.broadcast %cst_11 : f32 to vector<128x1xf32>
      %c0_12 = arith.constant 0 : index
      %c0_13 = arith.constant 0 : index
      %17 = vector.load %arg5[%c0_12, %c0_13] : memref<128x1xf32, #tpu.memory_space<vmem>>, vector<128x1xf32>
      tpu.vector_store %arg5[%c0_12, %c0_13], %16 {strides = array<i32>} : memref<128x1xf32, #tpu.memory_space<vmem>>, vector<128x1xf32>,
    } else {
    }
    %c0 = arith.constant 0 : index
    %c0_1 = arith.constant 0 : index
    %3 = vector.load %arg2[%c0, %c0_1] : memref<128x128xf32, #tpu.memory_space<vmem>>, vector<128x128xf32>
    %cst = arith.constant 0.000000e+00 : f32
    %4 = vector.broadcast %cst : f32 to vector<128x128xf32>
    %5 = arith.maximumf %3, %4 : vector<128x128xf32>
    %6 = arith.truncf %5 : vector<128x128xf32> to vector<128x128xbf16>
    %c0_2 = arith.constant 0 : index
    %c0_3 = arith.constant 0 : index
    %7 = vector.load %arg3[%c0_2, %c0_3] : memref<128x128xbf16, #tpu.memory_space<vmem>>, vector<128x128xbf16>
    tpu.vector_store %arg3[%c0_2, %c0_3], %6 {strides = array<i32>} : memref<128x128xbf16, #tpu.memory_space<vmem>>, vector<128x128xbf16>,
    %c0_4 = arith.constant 0 : index
    %c0_5 = arith.constant 0 : index
    %8 = vector.load %arg5[%c0_4, %c0_5] : memref<128x1xf32, #tpu.memory_space<vmem>>, vector<128x1xf32>
    %cst_6 = arith.constant dense<0.000000e+00> : vector<128xf32>
    %9 = vector.multi_reduction <add>, %5, %cst_6 [1] : vector<128x128xf32> to vector<128xf32>
    %10 = vector.shape_cast %9 : vector<128xf32> to vector<128x1xf32>
    %11 = arith.addf %8, %10 : vector<128x1xf32>
    %c0_7 = arith.constant 0 : index
    %c0_8 = arith.constant 0 : index
    %12 = vector.load %arg5[%c0_7, %c0_8] : memref<128x1xf32, #tpu.memory_space<vmem>>, vector<128x1xf32>
    tpu.vector_store %arg5[%c0_7, %c0_8], %11 {strides = array<i32>} : memref<128x1xf32, #tpu.memory_space<vmem>>, vector<128x1xf32>,
    %c0_i32_9 = arith.constant 0 : i32
    %13 = arith.cmpi eq, %arg1, %c0_i32_9 : i32
    %14 = arith.extui %13 : i1 to i32
    %c0_i32_10 = arith.constant 0 : i32
    %15 = arith.cmpi ne, %14, %c0_i32_10 : i32
    scf.if %15 {
      %c0_11 = arith.constant 0 : index
      %c0_12 = arith.constant 0 : index
      %16 = vector.load %arg5[%c0_11, %c0_12] : memref<128x1xf32, #tpu.memory_space<vmem>>, vector<128x1xf32>
      %cst_13 = arith.constant 1.000000e+00 : f32
      %17 = vector.broadcast %cst_13 : f32 to vector<128x1xf32>
      %18 = arith.addf %16, %17 : vector<128x1xf32>
      %19 = math.rsqrt %18 : vector<128x1xf32>
      %c0_14 = arith.constant 0 : index
      %c0_15 = arith.constant 0 : index
      %20 = vector.load %arg4[%c0_14, %c0_15] : memref<128x1xf32, #tpu.memory_space<vmem>>, vector<128x1xf32>
      tpu.vector_store %arg4[%c0_14, %c0_15], %19 {strides = array<i32>} : memref<128x1xf32, #tpu.memory_space<vmem>>, vector<128x1xf32>,
    } else {
    }
    return
  }
  func.func @transform_0(%arg0: i32, %arg1: i32) -> (i32, i32) {
    %c0_i32 = arith.constant 0 : i32
    return %arg0, %arg1 : i32, i32
  }
  func.func @transform_1(%arg0: i32, %arg1: i32) -> (i32, i32) {
    %c0_i32 = arith.constant 0 : i32
    return %arg0, %arg1 : i32, i32
  }
  func.func @transform_2(%arg0: i32, %arg1: i32) -> (i32, i32) {
    %c0_i32 = arith.constant 0 : i32
    %c0_i32_0 = arith.constant 0 : i32
    return %arg0, %c0_i32 : i32, i32
  }
}

</mosaic_0001>

<bundles_post_ra>
// kernel: tpu_custom_call.1
= control target key start
LH: loop header
LB: loop body
LE: loop exit
PB: predicated region body
PF: predicated region fallthrough
CT: control target
= control target key end

     0   :  { %8 = vsyncpa [#allocation4], 0  ;;  %s635_s0 = inlined_call_operand.hbm [shape: f32[128,128], index: 0, kind: input, shape index: {}]   ;;  %s636_s1 = inlined_call_operand.hbm [shape: bf16[128,128], index: 1, kind: output, shape index: {0}]   ;;  %s637_s2 = inlined_call_operand.vmem [shape: f32[128,1], index: 2, kind: output, shape index: {1}]  }
   0x1   :  { %9 = vsyncpa [#allocation5], 0  ;;  %s493_s9 = smov [#allocation3]   ;;  %s445_s13 = scalar_lea.hbm %s635_s0, 2048 }
   0x2   :  { %s15_s10 = sshll.u32 %s493_s9, 4  ;;  %p446_p0 = scmp.ne.s32.totalorder %s635_s0, %s445_s13  ;;  %s16_s10 = int_to_ptr.vmem [resolvable:$true] %s15_s10 }
   0x3   :  { %p449_p1 = scmp.lt.u32.totalorder %s445_s13, %s635_s0 }
   0x5   :  { %p451_p2 = pnand %p449_p1, %p446_p0 }
   0x7   :  { %454 = shalt.err (!%p451_p2)
}
   0x8   :  { %s455_s18 = scalar_lea.vmem %s16_s10, 2048  ;;  %p460_p4 = scmp.lt.s32.totalorder %s16_s10, %s16_s10 }
   0x9   :  { %p456_p3 = scmp.ne.s32.totalorder %s16_s10, %s455_s18  ;;  %p461_p5 = scmp.lt.s32.totalorder %s455_s18, %s455_s18 }
   0xb   :  { %p462_p6 = por %p461_p5, %p460_p4 }
   0xd   :  { %p463_p7 = pnand %p462_p6, %p456_p3 }
   0xf   :  { %466 = shalt.err (!%p463_p7)
}
  0x10   :  { %s494_s19 = smov 128   ;;  %s495_s20 = smov 8  }
  0x11   :  { %21 = dma.hbm_to_vmem [thread:$0]  %s635_s0, 2048, %s16_s10, [#allocation4], %s494_s19, %s494_s19, %s495_s20  }
  0x12   :  { %489 = dma.done.wait [#allocation4], 2048  }
  0x13   :  { %490 = vsyncadd [#allocation4], 4294965248  ;;  %vm29_vm0 = vcmask 7168   ;;  %v496_v0 = vmov 0.0   ;;  %v48_v1 = vld [vmem:[#allocation3 + $0x10] sm:$0xff]  ;;  %v46_v2 = vld [vmem:[#allocation3] sm:$0xff] }
  0x14   :  { %32 = vst.msk [vmem:[#allocation2 + $0x10] sm:$0xff] %vm29_vm0, %v496_v0  ;;  %30 = vst.msk [vmem:[#allocation2] sm:$0xff] %vm29_vm0, %v496_v0  ;;  %v49_v3 = vld [vmem:[#allocation3 + $0x18] sm:$0xff]  ;;  %v64_v4 = vmax.f32 %v48_v1, 0.0  ;;  %v62_v5 = vmax.f32 %v46_v2, 0.0  ;;  %v47_v7 = vld [vmem:[#allocation3 + $0x8] sm:$0xff] }
  0x15   :  { %31 = vst.msk [vmem:[#allocation2 + $0x8] sm:$0xff] %vm29_vm0, %v496_v0  ;;  %33 = vst.msk [vmem:[#allocation2 + $0x18] sm:$0xff] %vm29_vm0, %v496_v0  ;;  %v65_v6 = vmax.f32 %v49_v3, 0.0  ;;  %v51_v8 = vld [vmem:[#allocation3 + $0x28] sm:$0xff]  ;;  %v50_v9 = vld [vmem:[#allocation3 + $0x20] sm:$0xff]  ;;  %v63_v10 = vmax.f32 %v47_v7, 0.0 }
  0x16   :  { %34 = vst.msk [vmem:[#allocation2 + $0x20] sm:$0xff] %vm29_vm0, %v496_v0  ;;  %35 = vst.msk [vmem:[#allocation2 + $0x28] sm:$0xff] %vm29_vm0, %v496_v0  ;;  %v67_v11 = vmax.f32 %v51_v8, 0.0  ;;  %v66_v12 = vmax.f32 %v50_v9, 0.0  ;;  %v53_v13 = vld [vmem:[#allocation3 + $0x38] sm:$0xff]  ;;  %v52_v14 = vld [vmem:[#allocation3 + $0x30] sm:$0xff]  ;;  %178 = vadd.xlane.f32.xlu1 %v64_v4  ;;  %174 = vadd.xlane.f32.xlu0 %v62_v5 }
  0x17   :  { %36 = vst.msk [vmem:[#allocation2 + $0x30] sm:$0xff] %vm29_vm0, %v496_v0  ;;  %37 = vst.msk [vmem:[#allocation2 + $0x38] sm:$0xff] %vm29_vm0, %v496_v0  ;;  %v55_v15 = vld [vmem:[#allocation3 + $0x48] sm:$0xff]  ;;  %v367_v16 = vpack.c.bf16 %v65_v6, %v64_v4  ;;  %v69_v17 = vmax.f32 %v53_v13, 0.0  ;;  %v68_v18 = vmax.f32 %v52_v14, 0.0  ;;  %v54_v20 = vld [vmem:[#allocation3 + $0x40] sm:$0xff]  ;;  %v362_v23 = vpack.c.bf16 %v63_v10, %v62_v5 }
  0x18   :  { %38 = vst.msk [vmem:[#allocation2 + $0x40] sm:$0xff] %vm29_vm0, %v496_v0  ;;  %39 = vst.msk [vmem:[#allocation2 + $0x48] sm:$0xff] %vm29_vm0, %v496_v0  ;;  %v71_v19 = vmax.f32 %v55_v15, 0.0  ;;  %v57_v21 = vld [vmem:[#allocation3 + $0x58] sm:$0xff]  ;;  %v56_v22 = vld [vmem:[#allocation3 + $0x50] sm:$0xff]  ;;  %v372_v24 = vpack.c.bf16 %v67_v11, %v66_v12  ;;  %v70_v25 = vmax.f32 %v54_v20, 0.0 }
  0x19   :  { %40 = vst.msk [vmem:[#allocation2 + $0x50] sm:$0xff] %vm29_vm0, %v496_v0  ;;  %41 = vst.msk [vmem:[#allocation2 + $0x58] sm:$0xff] %vm29_vm0, %v496_v0  ;;  %v73_v26 = vmax.f32 %v57_v21, 0.0  ;;  %v59_v27 = vld [vmem:[#allocation3 + $0x68] sm:$0xff]  ;;  %v58_v28 = vld [vmem:[#allocation3 + $0x60] sm:$0xff]  ;;  %v377_v30 = vpack.c.bf16 %v69_v17, %v68_v18  ;;  %v72_v31 = vmax.f32 %v56_v22, 0.0 }
  0x1a   :  { %42 = vst.msk [vmem:[#allocation2 + $0x60] sm:$0xff] %vm29_vm0, %v496_v0  ;;  %43 = vst.msk [vmem:[#allocation2 + $0x68] sm:$0xff] %vm29_vm0, %v496_v0  ;;  %v61_v29 = vld [vmem:[#allocation3 + $0x78] sm:$0xff]  ;;  %v75_v32 = vmax.f32 %v59_v27, 0.0  ;;  %v74_v33 = vmax.f32 %v58_v28, 0.0  ;;  %v60_v34 = vld [vmem:[#allocation3 + $0x70] sm:$0xff]  ;;  %v382_v35 = vpack.c.bf16 %v71_v19, %v70_v25  ;;  %180 = vadd.xlane.f32.xlu1 %v65_v6  ;;  %176 = vadd.xlane.f32.xlu0 %v63_v10 }
  0x1b   :  { %44 = vst.msk [vmem:[#allocation2 + $0x70] sm:$0xff] %vm29_vm0, %v496_v0  ;;  %45 = vst.msk [vmem:[#allocation2 + $0x78] sm:$0xff] %vm29_vm0, %v496_v0  ;;  %v77_v36 = vmax.f32 %v61_v29, 0.0  ;;  %v76_v37 = vmax.f32 %v60_v34, 0.0  ;;  %v387_v38 = vpack.c.bf16 %v73_v26, %v72_v31  ;;  %s497_s0 = smov [#allocation6]  }
  0x1c   :  { %399 = vst [vmem:[#allocation6 + $0x8] sm:$0xff] %v367_v16   ;;  %363 = vst [vmem:[#allocation6] sm:$0xff] %v362_v23   ;;  %v392_v39 = vpack.c.bf16 %v75_v32, %v74_v33  ;;  %s311_s23 = sshll.u32 %s497_s0, 4  ;;  %s312_s23 = int_to_ptr.vmem [resolvable:$true] %s311_s23 }
  0x1d   :  { %400 = vst [vmem:[#allocation6 + $0x10] sm:$0xff] %v372_v24   ;;  %401 = vst [vmem:[#allocation6 + $0x18] sm:$0xff] %v377_v30   ;;  %v397_v40 = vpack.c.bf16 %v77_v36, %v76_v37  ;;  %s467_s24 = scalar_lea.vmem %s312_s23, 1024  ;;  %p472_p9 = scmp.lt.s32.totalorder %s312_s23, %s312_s23 }
  0x1e   :  { %402 = vst [vmem:[#allocation6 + $0x20] sm:$0xff] %v382_v35   ;;  %403 = vst [vmem:[#allocation6 + $0x28] sm:$0xff] %v387_v38   ;;  %184 = vadd.xlane.f32.xlu1 %v67_v11  ;;  %182 = vadd.xlane.f32.xlu0 %v66_v12  ;;  %p468_p8 = scmp.ne.s32.totalorder %s312_s23, %s467_s24  ;;  %p473_p10 = scmp.lt.s32.totalorder %s467_s24, %s467_s24 }
  0x1f   :  { %404 = vst [vmem:[#allocation6 + $0x30] sm:$0xff] %v392_v39   ;;  %405 = vst [vmem:[#allocation6 + $0x38] sm:$0xff] %v397_v40  }
  0x20   :  { %p474_p11 = por %p473_p10, %p472_p9 }
  0x22   :  { %188 = vadd.xlane.f32.xlu1 %v69_v17  ;;  %186 = vadd.xlane.f32.xlu0 %v68_v18  ;;  %p475_p12 = pnand %p474_p11, %p468_p8 }
  0x26   :  { %192 = vadd.xlane.f32.xlu1 %v71_v19  ;;  %190 = vadd.xlane.f32.xlu0 %v70_v25 }
  0x2a   :  { %196 = vadd.xlane.f32.xlu1 %v73_v26  ;;  %194 = vadd.xlane.f32.xlu0 %v72_v31 }
  0x2e   :  { %200 = vadd.xlane.f32.xlu1 %v75_v32  ;;  %198 = vadd.xlane.f32.xlu0 %v74_v33 }
  0x32   :  { %204 = vadd.xlane.f32.xlu1 %v77_v36  ;;  %202 = vadd.xlane.f32.xlu0 %v76_v37 }
  0x33   :  { %478 = shalt.err (!%p475_p12)
}
  0x34   :  { %s479_s27 = scalar_lea.hbm %s636_s1, 1024 }
  0x35   :  { %p480_p13 = scmp.ne.s32.totalorder %s636_s1, %s479_s27  ;;  %p483_p0 = scmp.lt.u32.totalorder %s479_s27, %s636_s1 }
  0x37   :  { %p485_p1 = pnand %p483_p0, %p480_p13 }
  0x39   :  { %488 = shalt.err (!%p485_p1)
}
  0x3a   :  { %s498_s4 = smov 64   ;;  %s499_s5 = smov 4   ;;  %v160_v41 = vld [vmem:[#allocation2 + $0x10] sm:$0xff]  ;;  %v158_v42 = vld [vmem:[#allocation2] sm:$0xff]  ;;  %v161_v47 = vld [vmem:[#allocation2 + $0x18] sm:$0xff] }
  0x3b   :  { %317 = dma.vmem_to_hbm [thread:$0]  %s312_s23, 1024, %s636_s1, [#allocation5], %s498_s4, %s498_s4, %s499_s5   ;;  %v159_v48 = vld [vmem:[#allocation2 + $0x8] sm:$0xff]  ;;  %v162_v54 = vld [vmem:[#allocation2 + $0x20] sm:$0xff]  ;;  %v165_v59 = vld [vmem:[#allocation2 + $0x38] sm:$0xff] }
  0x3c   :  { %v163_v53 = vld [vmem:[#allocation2 + $0x28] sm:$0xff]  ;;  %v164_v62 = vld [vmem:[#allocation2 + $0x30] sm:$0xff]  ;;  %v166_v8 = vld [vmem:[#allocation2 + $0x40] sm:$0xff] }
  0x3d   :  { %v167_v5 = vld [vmem:[#allocation2 + $0x48] sm:$0xff]  ;;  %v169_v15 = vld [vmem:[#allocation2 + $0x58] sm:$0xff]  ;;  %v168_v18 = vld [vmem:[#allocation2 + $0x50] sm:$0xff] }
  0x3e   :  { %v171_v25 = vld [vmem:[#allocation2 + $0x68] sm:$0xff]  ;;  %v170_v28 = vld [vmem:[#allocation2 + $0x60] sm:$0xff]  ;;  %v173_v37 = vld [vmem:[#allocation2 + $0x78] sm:$0xff] }
  0x3f   :  { %v172_v40 = vld [vmem:[#allocation2 + $0x70] sm:$0xff] }
  0xa3   :  { %v179_v43 = vpop.xlane.xlu1 %178  ;;  %v175_v44 = vpop.xlane.xlu0 %174 }
  0xa4   :  { %v208_v45 = vadd.f32 %v179_v43, %v160_v41  ;;  %v206_v46 = vadd.f32 %v175_v44, %v158_v42 }
  0xa6   :  { %225 = vst.msk [vmem:[#allocation2 + $0x10] sm:$0xff] %vm29_vm0, %v208_v45  ;;  %223 = vst.msk [vmem:[#allocation2] sm:$0xff] %vm29_vm0, %v206_v46 }
  0xa7   :  { %v181_v49 = vpop.xlane.xlu1 %180  ;;  %v177_v50 = vpop.xlane.xlu0 %176 }
  0xa8   :  { %v209_v51 = vadd.f32 %v181_v49, %v161_v47  ;;  %v207_v52 = vadd.f32 %v177_v50, %v159_v48 }
  0xaa   :  { %226 = vst.msk [vmem:[#allocation2 + $0x18] sm:$0xff] %vm29_vm0, %v209_v51  ;;  %224 = vst.msk [vmem:[#allocation2 + $0x8] sm:$0xff] %vm29_vm0, %v207_v52 }
  0xab   :  { %v185_v55 = vpop.xlane.xlu1 %184  ;;  %v183_v56 = vpop.xlane.xlu0 %182 }
  0xac   :  { %v211_v57 = vadd.f32 %v185_v55, %v163_v53  ;;  %v210_v58 = vadd.f32 %v183_v56, %v162_v54 }
  0xad   :  { %v244_v60 = vld [vmem:[#allocation2 + $0x10] sm:$0xff]  ;;  %v242_v61 = vld [vmem:[#allocation2] sm:$0xff] }
  0xae   :  { %v260_v63 = vadd.f32 1.0, %v244_v60  ;;  %v258_v0 = vadd.f32 1.0, %v242_v61  ;;  %228 = vst.msk [vmem:[#allocation2 + $0x28] sm:$0xff] %vm29_vm0, %v211_v57  ;;  %227 = vst.msk [vmem:[#allocation2 + $0x20] sm:$0xff] %vm29_vm0, %v210_v58 }
  0xaf   :  { %v189_v1 = vpop.xlane.xlu1 %188  ;;  %v187_v2 = vpop.xlane.xlu0 %186 }
  0xb0   :  { %413 = vrsqrt.f32 %v260_v63  ;;  %v213_v3 = vadd.f32 %v189_v1, %v165_v59  ;;  %v212_v4 = vadd.f32 %v187_v2, %v164_v62 }
  0xb1   :  { %415 = vrsqrt.f32 %v258_v0  ;;  %v245_v6 = vld [vmem:[#allocation2 + $0x18] sm:$0xff]  ;;  %v243_v7 = vld [vmem:[#allocation2 + $0x8] sm:$0xff] }
  0xb2   :  { %v261_v9 = vadd.f32 1.0, %v245_v6  ;;  %v259_v10 = vadd.f32 1.0, %v243_v7  ;;  %230 = vst.msk [vmem:[#allocation2 + $0x38] sm:$0xff] %vm29_vm0, %v213_v3  ;;  %229 = vst.msk [vmem:[#allocation2 + $0x30] sm:$0xff] %vm29_vm0, %v212_v4 }
  0xb3   :  { %v193_v11 = vpop.xlane.xlu1 %192  ;;  %v191_v12 = vpop.xlane.xlu0 %190 }
  0xb4   :  { %417 = vrsqrt.f32 %v261_v9  ;;  %v215_v13 = vadd.f32 %v193_v11, %v167_v5  ;;  %v214_v14 = vadd.f32 %v191_v12, %v166_v8 }
  0xb5   :  { %419 = vrsqrt.f32 %v259_v10  ;;  %v247_v16 = vld [vmem:[#allocation2 + $0x28] sm:$0xff]  ;;  %v246_v17 = vld [vmem:[#allocation2 + $0x20] sm:$0xff] }
  0xb6   :  { %v263_v19 = vadd.f32 1.0, %v247_v16  ;;  %v262_v20 = vadd.f32 1.0, %v246_v17  ;;  %232 = vst.msk [vmem:[#allocation2 + $0x48] sm:$0xff] %vm29_vm0, %v215_v13  ;;  %231 = vst.msk [vmem:[#allocation2 + $0x40] sm:$0xff] %vm29_vm0, %v214_v14 }
  0xb7   :  { %v197_v21 = vpop.xlane.xlu1 %196  ;;  %v195_v22 = vpop.xlane.xlu0 %194 }
  0xb8   :  { %421 = vrsqrt.f32 %v263_v19  ;;  %v217_v23 = vadd.f32 %v197_v21, %v169_v15  ;;  %v216_v24 = vadd.f32 %v195_v22, %v168_v18 }
  0xb9   :  { %423 = vrsqrt.f32 %v262_v20  ;;  %v249_v26 = vld [vmem:[#allocation2 + $0x38] sm:$0xff]  ;;  %v248_v27 = vld [vmem:[#allocation2 + $0x30] sm:$0xff] }
  0xba   :  { %v414_v29 = vpop.eup %413  ;;  %v265_v30 = vadd.f32 1.0, %v249_v26  ;;  %v264_v31 = vadd.f32 1.0, %v248_v27  ;;  %234 = vst.msk [vmem:[#allocation2 + $0x58] sm:$0xff] %vm29_vm0, %v217_v23  ;;  %233 = vst.msk [vmem:[#allocation2 + $0x50] sm:$0xff] %vm29_vm0, %v216_v24 }
  0xbb   :  { %v416_v32 = vpop.eup %415  ;;  %292 = vst.msk [vmem:[%s637_s2 + $0x10] sm:$0xff] %vm29_vm0, %v414_v29  ;;  %v201_v33 = vpop.xlane.xlu1 %200 }
  0xbc   :  { %v199_v34 = vpop.xlane.xlu0 %198  ;;  %290 = vst.msk [vmem:[%s637_s2] sm:$0xff] %vm29_vm0, %v416_v32  ;;  %425 = vrsqrt.f32 %v265_v30  ;;  %v219_v35 = vadd.f32 %v201_v33, %v171_v25 }
  0xbd   :  { %v218_v36 = vadd.f32 %v199_v34, %v170_v28  ;;  %427 = vrsqrt.f32 %v264_v31  ;;  %v251_v38 = vld [vmem:[#allocation2 + $0x48] sm:$0xff]  ;;  %v250_v39 = vld [vmem:[#allocation2 + $0x40] sm:$0xff] }
  0xbe   :  { %v418_v41 = vpop.eup %417  ;;  %v267_v42 = vadd.f32 1.0, %v251_v38  ;;  %v266_v43 = vadd.f32 1.0, %v250_v39  ;;  %236 = vst.msk [vmem:[#allocation2 + $0x68] sm:$0xff] %vm29_vm0, %v219_v35 }
  0xbf   :  { %235 = vst.msk [vmem:[#allocation2 + $0x60] sm:$0xff] %vm29_vm0, %v218_v36  ;;  %v420_v44 = vpop.eup %419  ;;  %293 = vst.msk [vmem:[%s637_s2 + $0x18] sm:$0xff] %vm29_vm0, %v418_v41  ;;  %v205_v45 = vpop.xlane.xlu1 %204 }
  0xc0   :  { %v203_v46 = vpop.xlane.xlu0 %202  ;;  %291 = vst.msk [vmem:[%s637_s2 + $0x8] sm:$0xff] %vm29_vm0, %v420_v44  ;;  %429 = vrsqrt.f32 %v267_v42  ;;  %v221_v47 = vadd.f32 %v205_v45, %v173_v37 }
  0xc1   :  { %v220_v48 = vadd.f32 %v203_v46, %v172_v40  ;;  %431 = vrsqrt.f32 %v266_v43  ;;  %v253_v49 = vld [vmem:[#allocation2 + $0x58] sm:$0xff]  ;;  %v252_v50 = vld [vmem:[#allocation2 + $0x50] sm:$0xff] }
  0xc2   :  { %v422_v51 = vpop.eup %421  ;;  %v269_v52 = vadd.f32 1.0, %v253_v49  ;;  %v268_v53 = vadd.f32 1.0, %v252_v50  ;;  %238 = vst.msk [vmem:[#allocation2 + $0x78] sm:$0xff] %vm29_vm0, %v221_v47 }
  0xc3   :  { %237 = vst.msk [vmem:[#allocation2 + $0x70] sm:$0xff] %vm29_vm0, %v220_v48  ;;  %v424_v54 = vpop.eup %423  ;;  %295 = vst.msk [vmem:[%s637_s2 + $0x28] sm:$0xff] %vm29_vm0, %v422_v51 }
  0xc4   :  { %294 = vst.msk [vmem:[%s637_s2 + $0x20] sm:$0xff] %vm29_vm0, %v424_v54  ;;  %433 = vrsqrt.f32 %v269_v52 }
  0xc5   :  { %435 = vrsqrt.f32 %v268_v53  ;;  %v255_v55 = vld [vmem:[#allocation2 + $0x68] sm:$0xff] }
  0xc6   :  { %v254_v56 = vld [vmem:[#allocation2 + $0x60] sm:$0xff]  ;;  %v426_v57 = vpop.eup %425  ;;  %v271_v58 = vadd.f32 1.0, %v255_v55 }
  0xc7   :  { %v270_v59 = vadd.f32 1.0, %v254_v56  ;;  %v428_v60 = vpop.eup %427  ;;  %297 = vst.msk [vmem:[%s637_s2 + $0x38] sm:$0xff] %vm29_vm0, %v426_v57 }
  0xc8   :  { %296 = vst.msk [vmem:[%s637_s2 + $0x30] sm:$0xff] %vm29_vm0, %v428_v60  ;;  %437 = vrsqrt.f32 %v271_v58 }
  0xc9   :  { %439 = vrsqrt.f32 %v270_v59  ;;  %v257_v61 = vld [vmem:[#allocation2 + $0x78] sm:$0xff] }
  0xca   :  { %v256_v62 = vld [vmem:[#allocation2 + $0x70] sm:$0xff]  ;;  %v430_v63 = vpop.eup %429  ;;  %v273_v0 = vadd.f32 1.0, %v257_v61 }
  0xcb   :  { %v272_v1 = vadd.f32 1.0, %v256_v62  ;;  %v432_v2 = vpop.eup %431  ;;  %299 = vst.msk [vmem:[%s637_s2 + $0x48] sm:$0xff] %vm29_vm0, %v430_v63 }
  0xcc   :  { %298 = vst.msk [vmem:[%s637_s2 + $0x40] sm:$0xff] %vm29_vm0, %v432_v2  ;;  %441 = vrsqrt.f32 %v273_v0 }
  0xcd   :  { %443 = vrsqrt.f32 %v272_v1 }
  0xce   :  { %v434_v3 = vpop.eup %433 }
  0xcf   :  { %v436_v4 = vpop.eup %435  ;;  %301 = vst.msk [vmem:[%s637_s2 + $0x58] sm:$0xff] %vm29_vm0, %v434_v3 }
  0xd0   :  { %300 = vst.msk [vmem:[%s637_s2 + $0x50] sm:$0xff] %vm29_vm0, %v436_v4 }
  0xd2   :  { %v438_v5 = vpop.eup %437 }
  0xd3   :  { %v440_v6 = vpop.eup %439  ;;  %303 = vst.msk [vmem:[%s637_s2 + $0x68] sm:$0xff] %vm29_vm0, %v438_v5 }
  0xd4   :  { %302 = vst.msk [vmem:[%s637_s2 + $0x60] sm:$0xff] %vm29_vm0, %v440_v6 }
  0xd6   :  { %v442_v7 = vpop.eup %441 }
  0xd7   :  { %v444_v8 = vpop.eup %443  ;;  %305 = vst.msk [vmem:[%s637_s2 + $0x78] sm:$0xff] %vm29_vm0, %v442_v7 }
  0xd8   :  { %304 = vst.msk [vmem:[%s637_s2 + $0x70] sm:$0xff] %vm29_vm0, %v444_v8 }
  0xd9   :  { %491 = dma.done.wait [#allocation5], 1024  }
  0xda   :  { %492 = vsyncadd [#allocation5], 4294966272 }
  0xdb   :  { %325 = vsyncpa [#allocation4], 1 }
  0xdc   :  { %326 = vsyncpa [#allocation5], 1 }

</bundles_post_ra>
